<compile_context>
chip_gen: v5e
topology: v5e:2x2
jax: 0.10.0
libtpu: 0.0.40
codegen_flags: <defaults>
</compile_context>

<pallas_src>
import jax
import jax.numpy as jnp
from jax.experimental import pallas as pl
from jax.experimental.pallas import tpu as pltpu


def lstm_fc_kernel(x_ref, wih_ref, whh_ref, b_ref, wfc_ref, bfc_ref, out_ref):
    """Single-invocation LSTM recurrence + fc head.

    x_ref   : (T*B, I)  time-major, flattened input (rows t*B:(t+1)*B = step t)
    wih_ref : (I, 4H)   W_ih^T   (PyTorch gate order i, f, g, o)
    whh_ref : (H, 4H)   W_hh^T
    b_ref   : (1, 4H)   b_ih + b_hh
    wfc_ref : (H, C)    W_fc^T
    bfc_ref : (1, C)    b_fc
    out_ref : (B, C)
    """
    B = out_ref.shape[0]
    H = whh_ref.shape[0]
    T = x_ref.shape[0] // B

    # (1) Input projection for every timestep in ONE MXU pass, bias fused.
    #     This is off the serial critical path; the broadcast of b happens once.
    pre = (jnp.dot(x_ref[...], wih_ref[...], preferred_element_type=jnp.float32)
           + b_ref[...])                                   # (T*B, 4H)

    w_hh = whh_ref[...]                                    # load once, reuse each step

    h = jnp.zeros((B, H), jnp.float32)
    c = jnp.zeros((B, H), jnp.float32)

    # (2) Recurrence fully unrolled (T is small & static).  h/c stay in vregs;
    #     each step's only matmul is the truly-serial h @ W_hh^T.
    for t in range(T):
        gates = pre[t * B:(t + 1) * B, :] + jnp.dot(
            h, w_hh, preferred_element_type=jnp.float32)   # (B, 4H)

        # (3) Full-vreg activations (2 EUP passes) then per-gate slices of the
        #     activated values (gate order i, f, g, o).
        sig = jax.nn.sigmoid(gates)
        tnh = jnp.tanh(gates)
        i_g = sig[:, 0 * H:1 * H]
        f_g = sig[:, 1 * H:2 * H]
        g_g = tnh[:, 2 * H:3 * H]
        o_g = sig[:, 3 * H:4 * H]

        c = f_g * c + i_g * g_g
        h = o_g * jnp.tanh(c)

    # dropout(hn[-1]) is identity in eval mode; fc head with fused bias.
    out = (jnp.dot(h, wfc_ref[...], preferred_element_type=jnp.float32)
           + bfc_ref[...])
    out_ref[...] = out.astype(out_ref.dtype)


def forex_model_forward(x, params):
    """x: (B, T, I) float32, batch_first like the PyTorch module."""
    B, T, I = x.shape
    H = params["w_hh"].shape[1]          # w_hh: (4H, H)
    C = params["w_fc"].shape[0]          # w_fc: (C, H)

    # Parameter / layout massaging in plain JAX (transposes, bias fusion).
    x_flat = jnp.transpose(x, (1, 0, 2)).reshape(T * B, I)   # time-major, flat
    wih_t = params["w_ih"].T                                 # (I, 4H)
    whh_t = params["w_hh"].T                                 # (H, 4H)
    b = (params["b_ih"] + params["b_hh"]).reshape(1, 4 * H)  # fused bias
    wfc_t = params["w_fc"].T                                 # (H, C)
    bfc = params["b_fc"].reshape(1, C)

    vmem = lambda: pl.BlockSpec(memory_space=pltpu.MemorySpace.VMEM)
    out = pl.pallas_call(
        lstm_fc_kernel,
        out_shape=jax.ShapeDtypeStruct((B, C), jnp.float32),
        # No grid: the whole problem (~10 KiB of operands) is resident in VMEM
        # for a single kernel invocation.
        in_specs=[vmem(), vmem(), vmem(), vmem(), vmem(), vmem()],
        out_specs=vmem(),
    )(x_flat, wih_t, whh_t, b, wfc_t, bfc)
    return out


def ref_forward(x, params):
    """Pure-JAX reference mirroring PyTorch LSTM + fc (eval mode)."""
    B, T, I = x.shape
    H = params["w_hh"].shape[1]
    h = jnp.zeros((B, H), jnp.float32)
    c = jnp.zeros((B, H), jnp.float32)
    wih_t = params["w_ih"].T
    whh_t = params["w_hh"].T
    b = params["b_ih"] + params["b_hh"]
    for t in range(T):
        gates = x[:, t, :] @ wih_t + h @ whh_t + b
        i_g = jax.nn.sigmoid(gates[:, :H])
        f_g = jax.nn.sigmoid(gates[:, H:2 * H])
        g_g = jnp.tanh(gates[:, 2 * H:3 * H])
        o_g = jax.nn.sigmoid(gates[:, 3 * H:])
        c = f_g * c + i_g * g_g
        h = o_g * jnp.tanh(c)
    return h @ params["w_fc"].T + params["b_fc"]


def init_params(key, input_size, hidden_size, num_classes):
    """Deterministic init matching PyTorch parameter shapes (U[-k, k], k=1/sqrt(H))."""
    k = 1.0 / jnp.sqrt(jnp.float32(hidden_size))
    keys = jax.random.split(key, 6)
    u = lambda kk, shape: jax.random.uniform(kk, shape, jnp.float32, -k, k)
    return {
        "w_ih": u(keys[0], (4 * hidden_size, input_size)),
        "w_hh": u(keys[1], (4 * hidden_size, hidden_size)),
        "b_ih": u(keys[2], (4 * hidden_size,)),
        "b_hh": u(keys[3], (4 * hidden_size,)),
        "w_fc": u(keys[4], (num_classes, hidden_size)),
        "b_fc": u(keys[5], (num_classes,)),
    }


if __name__ == "__main__":
    B, T, I, H, C = 8, 8, 32, 32, 8       # batch, seq, input_size, hidden_size, num_classes
    key = jax.random.PRNGKey(0)
    kx, kp = jax.random.split(key)
    x = jax.random.normal(kx, (B, T, I), jnp.float32)
    params = init_params(kp, I, H, C)

    out = forex_model_forward(x, params)
    out = jax.block_until_ready(out)

    ref = ref_forward(x, params)
    assert out.shape == (B, C)
    assert jnp.allclose(out, ref, atol=1e-5, rtol=1e-5), "mismatch vs JAX reference"
    print("KERNEL_OK")
</pallas_src>

<mosaic_0001>
module attributes {stable_mosaic.version = 11 : i64} {
  func.func @lstm_fc_kernel(%arg0: memref<64x32xf32, #tpu.memory_space<vmem>>, %arg1: memref<32x128xf32, #tpu.memory_space<vmem>>, %arg2: memref<32x128xf32, #tpu.memory_space<vmem>>, %arg3: memref<1x128xf32, #tpu.memory_space<vmem>>, %arg4: memref<32x8xf32, #tpu.memory_space<vmem>>, %arg5: memref<1x8xf32, #tpu.memory_space<vmem>>, %arg6: memref<8x8xf32, #tpu.memory_space<vmem>>) attributes {dimension_semantics = [], scalar_prefetch = 0 : i64, scratch_operands = 0 : i64, tpu.core_type = #tpu.core_type<tc>} {
    %c0 = arith.constant 0 : index
    %c0_0 = arith.constant 0 : index
    %0 = vector.load %arg0[%c0, %c0_0] : memref<64x32xf32, #tpu.memory_space<vmem>>, vector<64x32xf32>
    %c0_1 = arith.constant 0 : index
    %c0_2 = arith.constant 0 : index
    %1 = vector.load %arg1[%c0_1, %c0_2] : memref<32x128xf32, #tpu.memory_space<vmem>>, vector<32x128xf32>
    %cst = arith.constant dense<0.000000e+00> : vector<64x128xf32>
    %2 = tpu.matmul %0, %1, %cst {dimension_numbers = #tpu.dot_dimension_numbers<[1], [0], [0], [1], [0, 0, 1, 1], [], []>} : vector<64x32xf32>, vector<32x128xf32>, vector<64x128xf32> -> vector<64x128xf32>
    %c0_3 = arith.constant 0 : index
    %c0_4 = arith.constant 0 : index
    %3 = vector.load %arg3[%c0_3, %c0_4] : memref<1x128xf32, #tpu.memory_space<vmem>>, vector<1x128xf32>
    %4 = vector.broadcast %3 : vector<1x128xf32> to vector<64x128xf32>
    %5 = arith.addf %2, %4 : vector<64x128xf32>
    %c0_5 = arith.constant 0 : index
    %c0_6 = arith.constant 0 : index
    %6 = vector.load %arg2[%c0_5, %c0_6] : memref<32x128xf32, #tpu.memory_space<vmem>>, vector<32x128xf32>
    %cst_7 = arith.constant 0.000000e+00 : f32
    %7 = vector.broadcast %cst_7 : f32 to vector<8x32xf32>
    %cst_8 = arith.constant 0.000000e+00 : f32
    %8 = vector.broadcast %cst_8 : f32 to vector<8x32xf32>
    %9 = vector.extract_strided_slice %5 {offsets = [0, 0], sizes = [8, 128], strides = [1, 1]} : vector<64x128xf32> to vector<8x128xf32>
    %cst_9 = arith.constant dense<0.000000e+00> : vector<8x128xf32>
    %10 = tpu.matmul %7, %6, %cst_9 {dimension_numbers = #tpu.dot_dimension_numbers<[1], [0], [0], [1], [0, 0, 1, 1], [], []>} : vector<8x32xf32>, vector<32x128xf32>, vector<8x128xf32> -> vector<8x128xf32>
    %11 = arith.addf %9, %10 : vector<8x128xf32>
    %12 = arith.negf %11 : vector<8x128xf32>
    %13 = math.exp %12 : vector<8x128xf32>
    %cst_10 = arith.constant 1.000000e+00 : f32
    %14 = vector.broadcast %cst_10 : f32 to vector<8x128xf32>
    %15 = arith.addf %14, %13 : vector<8x128xf32>
    %16 = arith.divf %14, %15 : vector<8x128xf32>
    %17 = math.tanh %11 : vector<8x128xf32>
    %18 = vector.extract_strided_slice %16 {offsets = [0, 0], sizes = [8, 32], strides = [1, 1]} : vector<8x128xf32> to vector<8x32xf32>
    %19 = vector.extract_strided_slice %16 {offsets = [0, 32], sizes = [8, 32], strides = [1, 1]} : vector<8x128xf32> to vector<8x32xf32>
    %20 = vector.extract_strided_slice %17 {offsets = [0, 64], sizes = [8, 32], strides = [1, 1]} : vector<8x128xf32> to vector<8x32xf32>
    %21 = vector.extract_strided_slice %16 {offsets = [0, 96], sizes = [8, 32], strides = [1, 1]} : vector<8x128xf32> to vector<8x32xf32>
    %22 = arith.mulf %19, %8 : vector<8x32xf32>
    %23 = arith.mulf %18, %20 : vector<8x32xf32>
    %24 = arith.addf %22, %23 : vector<8x32xf32>
    %25 = math.tanh %24 : vector<8x32xf32>
    %26 = arith.mulf %21, %25 : vector<8x32xf32>
    %27 = vector.extract_strided_slice %5 {offsets = [8, 0], sizes = [8, 128], strides = [1, 1]} : vector<64x128xf32> to vector<8x128xf32>
    %cst_11 = arith.constant dense<0.000000e+00> : vector<8x128xf32>
    %28 = tpu.matmul %26, %6, %cst_11 {dimension_numbers = #tpu.dot_dimension_numbers<[1], [0], [0], [1], [0, 0, 1, 1], [], []>} : vector<8x32xf32>, vector<32x128xf32>, vector<8x128xf32> -> vector<8x128xf32>
    %29 = arith.addf %27, %28 : vector<8x128xf32>
    %30 = arith.negf %29 : vector<8x128xf32>
    %31 = math.exp %30 : vector<8x128xf32>
    %cst_12 = arith.constant 1.000000e+00 : f32
    %32 = vector.broadcast %cst_12 : f32 to vector<8x128xf32>
    %33 = arith.addf %32, %31 : vector<8x128xf32>
    %34 = arith.divf %32, %33 : vector<8x128xf32>
    %35 = math.tanh %29 : vector<8x128xf32>
    %36 = vector.extract_strided_slice %34 {offsets = [0, 0], sizes = [8, 32], strides = [1, 1]} : vector<8x128xf32> to vector<8x32xf32>
    %37 = vector.extract_strided_slice %34 {offsets = [0, 32], sizes = [8, 32], strides = [1, 1]} : vector<8x128xf32> to vector<8x32xf32>
    %38 = vector.extract_strided_slice %35 {offsets = [0, 64], sizes = [8, 32], strides = [1, 1]} : vector<8x128xf32> to vector<8x32xf32>
    %39 = vector.extract_strided_slice %34 {offsets = [0, 96], sizes = [8, 32], strides = [1, 1]} : vector<8x128xf32> to vector<8x32xf32>
    %40 = arith.mulf %37, %24 : vector<8x32xf32>
    %41 = arith.mulf %36, %38 : vector<8x32xf32>
    %42 = arith.addf %40, %41 : vector<8x32xf32>
    %43 = math.tanh %42 : vector<8x32xf32>
    %44 = arith.mulf %39, %43 : vector<8x32xf32>
    %45 = vector.extract_strided_slice %5 {offsets = [16, 0], sizes = [8, 128], strides = [1, 1]} : vector<64x128xf32> to vector<8x128xf32>
    %cst_13 = arith.constant dense<0.000000e+00> : vector<8x128xf32>
    %46 = tpu.matmul %44, %6, %cst_13 {dimension_numbers = #tpu.dot_dimension_numbers<[1], [0], [0], [1], [0, 0, 1, 1], [], []>} : vector<8x32xf32>, vector<32x128xf32>, vector<8x128xf32> -> vector<8x128xf32>
    %47 = arith.addf %45, %46 : vector<8x128xf32>
    %48 = arith.negf %47 : vector<8x128xf32>
    %49 = math.exp %48 : vector<8x128xf32>
    %cst_14 = arith.constant 1.000000e+00 : f32
    %50 = vector.broadcast %cst_14 : f32 to vector<8x128xf32>
    %51 = arith.addf %50, %49 : vector<8x128xf32>
    %52 = arith.divf %50, %51 : vector<8x128xf32>
    %53 = math.tanh %47 : vector<8x128xf32>
    %54 = vector.extract_strided_slice %52 {offsets = [0, 0], sizes = [8, 32], strides = [1, 1]} : vector<8x128xf32> to vector<8x32xf32>
    %55 = vector.extract_strided_slice %52 {offsets = [0, 32], sizes = [8, 32], strides = [1, 1]} : vector<8x128xf32> to vector<8x32xf32>
    %56 = vector.extract_strided_slice %53 {offsets = [0, 64], sizes = [8, 32], strides = [1, 1]} : vector<8x128xf32> to vector<8x32xf32>
    %57 = vector.extract_strided_slice %52 {offsets = [0, 96], sizes = [8, 32], strides = [1, 1]} : vector<8x128xf32> to vector<8x32xf32>
    %58 = arith.mulf %55, %42 : vector<8x32xf32>
    %59 = arith.mulf %54, %56 : vector<8x32xf32>
    %60 = arith.addf %58, %59 : vector<8x32xf32>
    %61 = math.tanh %60 : vector<8x32xf32>
    %62 = arith.mulf %57, %61 : vector<8x32xf32>
    %63 = vector.extract_strided_slice %5 {offsets = [24, 0], sizes = [8, 128], strides = [1, 1]} : vector<64x128xf32> to vector<8x128xf32>
    %cst_15 = arith.constant dense<0.000000e+00> : vector<8x128xf32>
    %64 = tpu.matmul %62, %6, %cst_15 {dimension_numbers = #tpu.dot_dimension_numbers<[1], [0], [0], [1], [0, 0, 1, 1], [], []>} : vector<8x32xf32>, vector<32x128xf32>, vector<8x128xf32> -> vector<8x128xf32>
    %65 = arith.addf %63, %64 : vector<8x128xf32>
    %66 = arith.negf %65 : vector<8x128xf32>
    %67 = math.exp %66 : vector<8x128xf32>
    %cst_16 = arith.constant 1.000000e+00 : f32
    %68 = vector.broadcast %cst_16 : f32 to vector<8x128xf32>
    %69 = arith.addf %68, %67 : vector<8x128xf32>
    %70 = arith.divf %68, %69 : vector<8x128xf32>
    %71 = math.tanh %65 : vector<8x128xf32>
    %72 = vector.extract_strided_slice %70 {offsets = [0, 0], sizes = [8, 32], strides = [1, 1]} : vector<8x128xf32> to vector<8x32xf32>
    %73 = vector.extract_strided_slice %70 {offsets = [0, 32], sizes = [8, 32], strides = [1, 1]} : vector<8x128xf32> to vector<8x32xf32>
    %74 = vector.extract_strided_slice %71 {offsets = [0, 64], sizes = [8, 32], strides = [1, 1]} : vector<8x128xf32> to vector<8x32xf32>
    %75 = vector.extract_strided_slice %70 {offsets = [0, 96], sizes = [8, 32], strides = [1, 1]} : vector<8x128xf32> to vector<8x32xf32>
    %76 = arith.mulf %73, %60 : vector<8x32xf32>
    %77 = arith.mulf %72, %74 : vector<8x32xf32>
    %78 = arith.addf %76, %77 : vector<8x32xf32>
    %79 = math.tanh %78 : vector<8x32xf32>
    %80 = arith.mulf %75, %79 : vector<8x32xf32>
    %81 = vector.extract_strided_slice %5 {offsets = [32, 0], sizes = [8, 128], strides = [1, 1]} : vector<64x128xf32> to vector<8x128xf32>
    %cst_17 = arith.constant dense<0.000000e+00> : vector<8x128xf32>
    %82 = tpu.matmul %80, %6, %cst_17 {dimension_numbers = #tpu.dot_dimension_numbers<[1], [0], [0], [1], [0, 0, 1, 1], [], []>} : vector<8x32xf32>, vector<32x128xf32>, vector<8x128xf32> -> vector<8x128xf32>
    %83 = arith.addf %81, %82 : vector<8x128xf32>
    %84 = arith.negf %83 : vector<8x128xf32>
    %85 = math.exp %84 : vector<8x128xf32>
    %cst_18 = arith.constant 1.000000e+00 : f32
    %86 = vector.broadcast %cst_18 : f32 to vector<8x128xf32>
    %87 = arith.addf %86, %85 : vector<8x128xf32>
    %88 = arith.divf %86, %87 : vector<8x128xf32>
    %89 = math.tanh %83 : vector<8x128xf32>
    %90 = vector.extract_strided_slice %88 {offsets = [0, 0], sizes = [8, 32], strides = [1, 1]} : vector<8x128xf32> to vector<8x32xf32>
    %91 = vector.extract_strided_slice %88 {offsets = [0, 32], sizes = [8, 32], strides = [1, 1]} : vector<8x128xf32> to vector<8x32xf32>
    %92 = vector.extract_strided_slice %89 {offsets = [0, 64], sizes = [8, 32], strides = [1, 1]} : vector<8x128xf32> to vector<8x32xf32>
    %93 = vector.extract_strided_slice %88 {offsets = [0, 96], sizes = [8, 32], strides = [1, 1]} : vector<8x128xf32> to vector<8x32xf32>
    %94 = arith.mulf %91, %78 : vector<8x32xf32>
    %95 = arith.mulf %90, %92 : vector<8x32xf32>
    %96 = arith.addf %94, %95 : vector<8x32xf32>
    %97 = math.tanh %96 : vector<8x32xf32>
    %98 = arith.mulf %93, %97 : vector<8x32xf32>
    %99 = vector.extract_strided_slice %5 {offsets = [40, 0], sizes = [8, 128], strides = [1, 1]} : vector<64x128xf32> to vector<8x128xf32>
    %cst_19 = arith.constant dense<0.000000e+00> : vector<8x128xf32>
    %100 = tpu.matmul %98, %6, %cst_19 {dimension_numbers = #tpu.dot_dimension_numbers<[1], [0], [0], [1], [0, 0, 1, 1], [], []>} : vector<8x32xf32>, vector<32x128xf32>, vector<8x128xf32> -> vector<8x128xf32>
    %101 = arith.addf %99, %100 : vector<8x128xf32>
    %102 = arith.negf %101 : vector<8x128xf32>
    %103 = math.exp %102 : vector<8x128xf32>
    %cst_20 = arith.constant 1.000000e+00 : f32
    %104 = vector.broadcast %cst_20 : f32 to vector<8x128xf32>
    %105 = arith.addf %104, %103 : vector<8x128xf32>
    %106 = arith.divf %104, %105 : vector<8x128xf32>
    %107 = math.tanh %101 : vector<8x128xf32>
    %108 = vector.extract_strided_slice %106 {offsets = [0, 0], sizes = [8, 32], strides = [1, 1]} : vector<8x128xf32> to vector<8x32xf32>
    %109 = vector.extract_strided_slice %106 {offsets = [0, 32], sizes = [8, 32], strides = [1, 1]} : vector<8x128xf32> to vector<8x32xf32>
    %110 = vector.extract_strided_slice %107 {offsets = [0, 64], sizes = [8, 32], strides = [1, 1]} : vector<8x128xf32> to vector<8x32xf32>
    %111 = vector.extract_strided_slice %106 {offsets = [0, 96], sizes = [8, 32], strides = [1, 1]} : vector<8x128xf32> to vector<8x32xf32>
    %112 = arith.mulf %109, %96 : vector<8x32xf32>
    %113 = arith.mulf %108, %110 : vector<8x32xf32>
    %114 = arith.addf %112, %113 : vector<8x32xf32>
    %115 = math.tanh %114 : vector<8x32xf32>
    %116 = arith.mulf %111, %115 : vector<8x32xf32>
    %117 = vector.extract_strided_slice %5 {offsets = [48, 0], sizes = [8, 128], strides = [1, 1]} : vector<64x128xf32> to vector<8x128xf32>
    %cst_21 = arith.constant dense<0.000000e+00> : vector<8x128xf32>
    %118 = tpu.matmul %116, %6, %cst_21 {dimension_numbers = #tpu.dot_dimension_numbers<[1], [0], [0], [1], [0, 0, 1, 1], [], []>} : vector<8x32xf32>, vector<32x128xf32>, vector<8x128xf32> -> vector<8x128xf32>
    %119 = arith.addf %117, %118 : vector<8x128xf32>
    %120 = arith.negf %119 : vector<8x128xf32>
    %121 = math.exp %120 : vector<8x128xf32>
    %cst_22 = arith.constant 1.000000e+00 : f32
    %122 = vector.broadcast %cst_22 : f32 to vector<8x128xf32>
    %123 = arith.addf %122, %121 : vector<8x128xf32>
    %124 = arith.divf %122, %123 : vector<8x128xf32>
    %125 = math.tanh %119 : vector<8x128xf32>
    %126 = vector.extract_strided_slice %124 {offsets = [0, 0], sizes = [8, 32], strides = [1, 1]} : vector<8x128xf32> to vector<8x32xf32>
    %127 = vector.extract_strided_slice %124 {offsets = [0, 32], sizes = [8, 32], strides = [1, 1]} : vector<8x128xf32> to vector<8x32xf32>
    %128 = vector.extract_strided_slice %125 {offsets = [0, 64], sizes = [8, 32], strides = [1, 1]} : vector<8x128xf32> to vector<8x32xf32>
    %129 = vector.extract_strided_slice %124 {offsets = [0, 96], sizes = [8, 32], strides = [1, 1]} : vector<8x128xf32> to vector<8x32xf32>
    %130 = arith.mulf %127, %114 : vector<8x32xf32>
    %131 = arith.mulf %126, %128 : vector<8x32xf32>
    %132 = arith.addf %130, %131 : vector<8x32xf32>
    %133 = math.tanh %132 : vector<8x32xf32>
    %134 = arith.mulf %129, %133 : vector<8x32xf32>
    %135 = vector.extract_strided_slice %5 {offsets = [56, 0], sizes = [8, 128], strides = [1, 1]} : vector<64x128xf32> to vector<8x128xf32>
    %cst_23 = arith.constant dense<0.000000e+00> : vector<8x128xf32>
    %136 = tpu.matmul %134, %6, %cst_23 {dimension_numbers = #tpu.dot_dimension_numbers<[1], [0], [0], [1], [0, 0, 1, 1], [], []>} : vector<8x32xf32>, vector<32x128xf32>, vector<8x128xf32> -> vector<8x128xf32>
    %137 = arith.addf %135, %136 : vector<8x128xf32>
    %138 = arith.negf %137 : vector<8x128xf32>
    %139 = math.exp %138 : vector<8x128xf32>
    %cst_24 = arith.constant 1.000000e+00 : f32
    %140 = vector.broadcast %cst_24 : f32 to vector<8x128xf32>
    %141 = arith.addf %140, %139 : vector<8x128xf32>
    %142 = arith.divf %140, %141 : vector<8x128xf32>
    %143 = math.tanh %137 : vector<8x128xf32>
    %144 = vector.extract_strided_slice %142 {offsets = [0, 0], sizes = [8, 32], strides = [1, 1]} : vector<8x128xf32> to vector<8x32xf32>
    %145 = vector.extract_strided_slice %142 {offsets = [0, 32], sizes = [8, 32], strides = [1, 1]} : vector<8x128xf32> to vector<8x32xf32>
    %146 = vector.extract_strided_slice %143 {offsets = [0, 64], sizes = [8, 32], strides = [1, 1]} : vector<8x128xf32> to vector<8x32xf32>
    %147 = vector.extract_strided_slice %142 {offsets = [0, 96], sizes = [8, 32], strides = [1, 1]} : vector<8x128xf32> to vector<8x32xf32>
    %148 = arith.mulf %145, %132 : vector<8x32xf32>
    %149 = arith.mulf %144, %146 : vector<8x32xf32>
    %150 = arith.addf %148, %149 : vector<8x32xf32>
    %151 = math.tanh %150 : vector<8x32xf32>
    %152 = arith.mulf %147, %151 : vector<8x32xf32>
    %c0_25 = arith.constant 0 : index
    %c0_26 = arith.constant 0 : index
    %153 = vector.load %arg4[%c0_25, %c0_26] : memref<32x8xf32, #tpu.memory_space<vmem>>, vector<32x8xf32>
    %cst_27 = arith.constant dense<0.000000e+00> : vector<8x8xf32>
    %154 = tpu.matmul %152, %153, %cst_27 {dimension_numbers = #tpu.dot_dimension_numbers<[1], [0], [0], [1], [0, 0, 1, 1], [], []>} : vector<8x32xf32>, vector<32x8xf32>, vector<8x8xf32> -> vector<8x8xf32>
    %c0_28 = arith.constant 0 : index
    %c0_29 = arith.constant 0 : index
    %155 = vector.load %arg5[%c0_28, %c0_29] : memref<1x8xf32, #tpu.memory_space<vmem>>, vector<1x8xf32>
    %156 = vector.broadcast %155 : vector<1x8xf32> to vector<8x8xf32>
    %157 = arith.addf %154, %156 : vector<8x8xf32>
    %c0_30 = arith.constant 0 : index
    %c0_31 = arith.constant 0 : index
    %158 = vector.load %arg6[%c0_30, %c0_31] : memref<8x8xf32, #tpu.memory_space<vmem>>, vector<8x8xf32>
    tpu.vector_store %arg6[%c0_30, %c0_31], %157 {strides = array<i32>} : memref<8x8xf32, #tpu.memory_space<vmem>>, vector<8x8xf32>,
    return
  }
}

</mosaic_0001>

<bundles_post_ra>
// kernel: tpu_custom_call.1
= control target key start
LH: loop header
LB: loop body
LE: loop exit
PB: predicated region body
PF: predicated region fallthrough
CT: control target
= control target key end

     0   :  { %s1006_s0 = inlined_call_operand.vmem [shape: f32[64,32], index: 0, kind: input, shape index: {}]   ;;  %s1007_s1 = inlined_call_operand.vmem [shape: f32[32,128], index: 1, kind: input, shape index: {}]   ;;  %s1008_s2 = inlined_call_operand.vmem [shape: f32[32,128], index: 2, kind: input, shape index: {}]   ;;  %s1009_s3 = inlined_call_operand.vmem [shape: f32[1,128], index: 3, kind: input, shape index: {}]   ;;  %s1010_s4 = inlined_call_operand.vmem [shape: f32[32,8], index: 4, kind: input, shape index: {}]   ;;  %s1011_s5 = inlined_call_operand.vmem [shape: f32[1,8], index: 5, kind: input, shape index: {}]   ;;  %s1012_s6 = inlined_call_operand.hbm [shape: f32[8,8], index: 6, kind: output, shape index: {}]  }
   0x1   :  { %v35_v0 = vld [vmem:[%s1007_s1 + $0x18] sm:$0xff]  ;;  %v34_v1 = vld [vmem:[%s1007_s1 + $0x10] sm:$0xff]  ;;  %v33_v3 = vld [vmem:[%s1007_s1 + $0x8] sm:$0xff] }
   0x2   :  { %687 = vmatpush.msra.mxu1 %v35_v0  ;;  %77 = vmatpush.msra.mxu0 %v35_v0  ;;  %v839_v2 = vld [vmem:[%s1008_s2 + $0x18] sm:$0xff]  ;;  %v848_v4 = vld [vmem:[%s1008_s2 + $0x10] sm:$0xff]  ;;  %v32_v5 = vld [vmem:[%s1007_s1] sm:$0xff] }
   0x3   :  { %688 = vmatpush.msra.mxu2 %v35_v0  ;;  %251 = vmatpush.msra.mxu3 %v839_v2 }
   0x4   :  { %689 = vmatpush.msra.mxu1 %v34_v1  ;;  %78 = vmatpush.msra.mxu0 %v34_v1 }
   0x5   :  { %690 = vmatpush.msra.mxu2 %v34_v1  ;;  %252 = vmatpush.msra.mxu3 %v848_v4 }
   0x6   :  { %11 = vsyncpa [#allocation3], 0  ;;  %691 = vmatpush.msra.mxu1 %v33_v3  ;;  %v29_v6 = vld [vmem:[%s1006_s0 + $0x28] sm:$0xff]  ;;  %vm40_vm0 = vcmask 261120   ;;  %79 = vmatpush.msra.mxu0 %v33_v3  ;;  %v24_v8 = vld [vmem:[%s1006_s0] sm:$0xff]  ;;  %v791_v10 = vmov 0.0  }
   0x7   :  { %v860_v7 = vld [vmem:[%s1008_s2 + $0x8] sm:$0xff]  ;;  %692 = vmatpush.msra.mxu2 %v33_v3  ;;  %v872_v9 = vld [vmem:[%s1008_s2] sm:$0xff]  ;;  %s792_s17 = smov 64   ;;  %v30_v37 = vld [vmem:[%s1006_s0 + $0x30] sm:$0xff]  ;;  %s794_s1 = smov [#allocation2]  }
   0x8   :  { %253 = vmatpush.msra.mxu3 %v860_v7  ;;  %693 = vmatpush.msra.mxu1 %v32_v5  ;;  %v899_v13 = vld [vmem:[%s1009_s3] ss:$0 sm:$0xff]  ;;  %s793_s3 = smov 32   ;;  %v31_v38 = vld [vmem:[%s1006_s0 + $0x38] sm:$0xff]  ;;  %v25_v41 = vld [vmem:[%s1006_s0 + $0x8] sm:$0xff]  ;;  %s652_s15 = sshll.u32 %s794_s1, 4  ;;  %s653_s15 = int_to_ptr.vmem [resolvable:$true] %s652_s15 }
   0x9   :  { %80 = vmatpush.msra.mxu0 %v32_v5  ;;  %668 = vmatmul.msk.f32.vlgmr.msra.gmra.mxu1 %vm40_vm0, %v29_v6 }
   0xa   :  { %663 = vmatmul.msk.f32.vlgmr.msra.gmra.mxu0 %vm40_vm0, %v24_v8  ;;  %125 = vmatpush.msrb.mxu1 %v839_v2 }
   0xb   :  { %694 = vmatpush.msra.mxu2 %v32_v5  ;;  %254 = vmatpush.msra.mxu3 %v872_v9 }
   0xc   :  { %126 = vmatpush.msrb.mxu1 %v848_v4  ;;  %669 = vmatmul.msk.f32.vlgmr.msra.gmra.mxu2 %vm40_vm0, %v30_v37 }
   0xd   :  { %188 = vmatpush.msrb.mxu2 %v839_v2  ;;  %440 = vmatpush.msrb.mxu3 %v839_v2 }
   0xe   :  { %127 = vmatpush.msrb.mxu1 %v860_v7 }
   0xf   :  { %189 = vmatpush.msrb.mxu2 %v848_v4  ;;  %441 = vmatpush.msrb.mxu3 %v848_v4 }
  0x10   :  { %128 = vmatpush.msrb.mxu1 %v872_v9 }
  0x11   :  { %190 = vmatpush.msrb.mxu2 %v860_v7  ;;  %442 = vmatpush.msrb.mxu3 %v860_v7 }
  0x12   :  { %129 = vmatmul.f32.vlgmr.msrb.gmra.mxu1 %v791_v10  ;;  %664 = vmatmul.msk.f32.gmra.mxu0 %vm40_vm0, %v25_v41 }
  0x13   :  { %191 = vmatpush.msrb.mxu2 %v872_v9  ;;  %314 = vmatpush.msra.mxu1 %v839_v2 }
  0x14   :  { %443 = vmatpush.msrb.mxu3 %v872_v9  ;;  %670 = vmatmul.msk.f32.gmra.mxu2 %vm40_vm0, %v31_v38 }
  0x15   :  { %315 = vmatpush.msra.mxu1 %v848_v4  ;;  %377 = vmatpush.msra.mxu2 %v839_v2 }
  0x17   :  { %316 = vmatpush.msra.mxu1 %v860_v7  ;;  %378 = vmatpush.msra.mxu2 %v848_v4 }
  0x19   :  { %317 = vmatpush.msra.mxu1 %v872_v9  ;;  %379 = vmatpush.msra.mxu2 %v860_v7 }
  0x1b   :  { %503 = vmatpush.msrb.mxu1 %v839_v2  ;;  %380 = vmatpush.msra.mxu2 %v872_v9 }
  0x1d   :  { %504 = vmatpush.msrb.mxu1 %v848_v4 }
  0x1f   :  { %505 = vmatpush.msrb.mxu1 %v860_v7 }
  0x21   :  { %506 = vmatpush.msrb.mxu1 %v872_v9 }
  0x86   :  { %v894_v11 = vpop.f32.mrf.mxu1 }
  0x87   :  { %v82_v12 = vpop.f32.mrf.mxu0 }
  0x88   :  { %v83_v14 = vadd.f32 %v899_v13, %v82_v12 }
  0x8f   :  { %v130_v15 = vpop.f32.mrf.mxu1  ;;  %v927_v43 = vpop.f32.mrf.mxu2 }
  0x90   :  { %v133_v16 = vadd.f32 %v130_v15, %v83_v14  ;;  %v85_v45 = vpop.f32.mrf.mxu0 }
  0x91   :  { %v86_v46 = vadd.f32 %v899_v13, %v85_v45 }
  0x92   :  { %701 = vtanh.f32 %v133_v16  ;;  %v671_v18 = vmul.f32 -1.442695, %v133_v16 }
  0x94   :  { %703 = vpow2.f32 %v671_v18 }
  0x97   :  { %v929_v44 = vpop.f32.mrf.mxu2 }
  0x98   :  { %v702_v17 = vpop.eup %701 }
  0x99   :  { %156 = vrot.lane.b32.xlu0 %v702_v17, %s792_s17 }
  0x9a   :  { %v704_v19 = vpop.eup %703 }
  0x9b   :  { %v137_v20 = vadd.f32 1.0, %v704_v19 }
  0x9d   :  { %705 = vrcp.f32 %v137_v20  ;;  %v149_v26 = vand.u32 2147483648, %v137_v20  ;;  %vm143_vm2 = vweird.f32 %v137_v20  ;;  %v147_v27 = vand.u32 2147483647, %v137_v20 }
  0x9f   :  { %v150_v29 = vor.u32 1.1754944e-38, %v149_v26  ;;  %vm148_vm4 = vcmp.eq.f32.partialorder %v147_v27, 8.507059e+37 }
  0xa3   :  { %v706_v21 = vpop.eup %705 }
  0xa4   :  { %v139_v22 = vmul.f32 %v706_v21, %v137_v20  ;;  %vm144_vm1 = vweird.f32 %v706_v21 }
  0xa5   :  { %vm145_vm3 = vmor %vm143_vm2, %vm144_vm1 }
  0xa6   :  { %v140_v23 = vsub.f32 1.0, %v139_v22 }
  0xa8   :  { %v141_v24 = vmul.f32 %v706_v21, %v140_v23 }
  0xaa   :  { %v142_v25 = vadd.f32 %v706_v21, %v141_v24 }
  0xac   :  { %v146_v28 = vsel %vm145_vm3, %v706_v21, %v142_v25 }
  0xad   :  { %v151_v31 = vsel %vm148_vm4, %v150_v29, %v146_v28 }
  0xae   :  { %v154_v33 = vmul.f32 0.0, %v151_v31 }
 0x10b   :  { %v157_v30 = vpop.permute.xlu0 %156 }
 0x10c   :  { %v159_v32 = vmul.f32 %v157_v30, %v151_v31 }
 0x10e   :  { %161 = vrot.lane.b32.xlu0 %v159_v32, %s793_s3 }
 0x180   :  { %v162_v34 = vpop.permute.xlu0 %161 }
 0x181   :  { %v164_v35 = vadd.f32 %v162_v34, %v154_v33 }
 0x183   :  { %707 = vtanh.f32 %v164_v35 }
 0x189   :  { %v708_v36 = vpop.eup %707 }
 0x18a   :  { %167 = vrot.lane.b32.xlu1 %v708_v36, %s792_s17 }
 0x1fc   :  { %v168_v39 = vpop.permute.xlu1 %167 }
 0x1fd   :  { %v170_v40 = vmul.f32 %v168_v39, %v151_v31 }
 0x1ff   :  { %172 = vrot.lane.b32.xlu1 %v170_v40, %s793_s3 }
 0x271   :  { %v173_v42 = vpop.permute.xlu1 %172 }
 0x272   :  { %672 = vmatmul.msk.f32.vlgmr.msrb.gmra.mxu2 %vm40_vm0, %v173_v42 }
 0x273   :  { %566 = vmatpush.msrb.mxu2 %v839_v2 }
 0x275   :  { %567 = vmatpush.msrb.mxu2 %v848_v4 }
 0x277   :  { %568 = vmatpush.msrb.mxu2 %v860_v7  ;;  %v26_v7 = vld [vmem:[%s1006_s0 + $0x10] sm:$0xff] }
 0x278   :  { %665 = vmatmul.msk.f32.gmra.mxu0 %vm40_vm0, %v26_v7 }
 0x279   :  { %569 = vmatpush.msrb.mxu2 %v872_v9 }
 0x2f5   :  { %v193_v47 = vpop.f32.mrf.mxu2  ;;  %v88_v9 = vpop.f32.mrf.mxu0 }
 0x2f6   :  { %v196_v48 = vadd.f32 %v193_v47, %v86_v46  ;;  %v89_v10 = vadd.f32 %v899_v13, %v88_v9 }
 0x2f8   :  { %709 = vtanh.f32 %v196_v48  ;;  %v673_v50 = vmul.f32 -1.442695, %v196_v48 }
 0x2fa   :  { %711 = vpow2.f32 %v673_v50 }
 0x2fe   :  { %v710_v49 = vpop.eup %709 }
 0x2ff   :  { %219 = vrot.lane.b32.xlu2 %v710_v49, %s792_s17 }
 0x300   :  { %v712_v51 = vpop.eup %711 }
 0x301   :  { %v200_v52 = vadd.f32 1.0, %v712_v51 }
 0x303   :  { %713 = vrcp.f32 %v200_v52  ;;  %v212_v58 = vand.u32 2147483648, %v200_v52  ;;  %vm206_vm6 = vweird.f32 %v200_v52  ;;  %v210_v59 = vand.u32 2147483647, %v200_v52 }
 0x305   :  { %v213_v61 = vor.u32 1.1754944e-38, %v212_v58  ;;  %vm211_vm8 = vcmp.eq.f32.partialorder %v210_v59, 8.507059e+37 }
 0x309   :  { %v714_v53 = vpop.eup %713 }
 0x30a   :  { %v202_v54 = vmul.f32 %v714_v53, %v200_v52  ;;  %vm207_vm5 = vweird.f32 %v714_v53 }
 0x30b   :  { %vm208_vm7 = vmor %vm206_vm6, %vm207_vm5 }
 0x30c   :  { %v203_v55 = vsub.f32 1.0, %v202_v54 }
 0x30e   :  { %v204_v56 = vmul.f32 %v714_v53, %v203_v55 }
 0x310   :  { %v205_v57 = vadd.f32 %v714_v53, %v204_v56 }
 0x312   :  { %v209_v60 = vsel %vm208_vm7, %v714_v53, %v205_v57 }
 0x313   :  { %v214_v63 = vsel %vm211_vm8, %v213_v61, %v209_v60 }
 0x314   :  { %v217_v1 = vmul.f32 %v214_v63, %v164_v35  ;;  %v27_v35 = vld [vmem:[%s1006_s0 + $0x18] sm:$0xff] }
 0x315   :  { %666 = vmatmul.msk.f32.gmra.mxu0 %vm40_vm0, %v27_v35 }
 0x359   :  { %v220_v62 = vpop.permute.xlu2 %219 }
 0x35a   :  { %v222_v0 = vmul.f32 %v220_v62, %v214_v63 }
 0x35c   :  { %224 = vrot.lane.b32.xlu2 %v222_v0, %s793_s3 }
 0x392   :  { %v91_v39 = vpop.f32.mrf.mxu0 }
 0x393   :  { %v92_v40 = vadd.f32 %v899_v13, %v91_v39 }
 0x3b6   :  { %v225_v2 = vpop.permute.xlu2 %224 }
 0x3b7   :  { %v227_v3 = vadd.f32 %v225_v2, %v217_v1 }
 0x3b9   :  { %715 = vtanh.f32 %v227_v3 }
 0x3bf   :  { %v716_v4 = vpop.eup %715 }
 0x3c0   :  { %230 = vrot.lane.b32.xlu0 %v716_v4, %s792_s17 }
 0x432   :  { %v231_v5 = vpop.permute.xlu0 %230 }
 0x433   :  { %v233_v6 = vmul.f32 %v231_v5, %v214_v63 }
 0x435   :  { %235 = vrot.lane.b32.xlu1 %v233_v6, %s793_s3 }
 0x4a7   :  { %v236_v8 = vpop.permute.xlu1 %235 }
 0x4a8   :  { %674 = vmatmul.msk.f32.vlgmr.msra.gmra.mxu3 %vm40_vm0, %v236_v8 }
 0x52b   :  { %v256_v12 = vpop.f32.mrf.mxu3 }
 0x52c   :  { %v259_v14 = vadd.f32 %v256_v12, %v89_v10 }
 0x52e   :  { %717 = vtanh.f32 %v259_v14  ;;  %v675_v16 = vmul.f32 -1.442695, %v259_v14 }
 0x530   :  { %719 = vpow2.f32 %v675_v16 }
 0x534   :  { %v718_v15 = vpop.eup %717 }
 0x535   :  { %282 = vrot.lane.b32.xlu2 %v718_v15, %s792_s17 }
 0x536   :  { %v720_v17 = vpop.eup %719 }
 0x537   :  { %v263_v18 = vadd.f32 1.0, %v720_v17 }
 0x539   :  { %721 = vrcp.f32 %v263_v18  ;;  %v275_v24 = vand.u32 2147483648, %v263_v18  ;;  %vm269_vm10 = vweird.f32 %v263_v18  ;;  %v273_v25 = vand.u32 2147483647, %v263_v18 }
 0x53b   :  { %v276_v27 = vor.u32 1.1754944e-38, %v275_v24  ;;  %vm274_vm12 = vcmp.eq.f32.partialorder %v273_v25, 8.507059e+37 }
 0x53f   :  { %v722_v19 = vpop.eup %721 }
 0x540   :  { %v265_v20 = vmul.f32 %v722_v19, %v263_v18  ;;  %vm270_vm9 = vweird.f32 %v722_v19 }
 0x541   :  { %vm271_vm11 = vmor %vm269_vm10, %vm270_vm9 }
 0x542   :  { %v266_v21 = vsub.f32 1.0, %v265_v20 }
 0x544   :  { %v267_v22 = vmul.f32 %v722_v19, %v266_v21 }
 0x546   :  { %v268_v23 = vadd.f32 %v722_v19, %v267_v22 }
 0x548   :  { %v272_v26 = vsel %vm271_vm11, %v722_v19, %v268_v23 }
 0x549   :  { %v277_v29 = vsel %vm274_vm12, %v276_v27, %v272_v26 }
 0x54a   :  { %v280_v31 = vmul.f32 %v277_v29, %v227_v3  ;;  %v28_v3 = vld [vmem:[%s1006_s0 + $0x20] sm:$0xff] }
 0x54b   :  { %667 = vmatmul.msk.f32.gmra.mxu0 %vm40_vm0, %v28_v3 }
 0x58f   :  { %v283_v28 = vpop.permute.xlu2 %282 }
 0x590   :  { %v285_v30 = vmul.f32 %v283_v28, %v277_v29 }
 0x592   :  { %287 = vrot.lane.b32.xlu0 %v285_v30, %s793_s3 }
 0x5c8   :  { %v94_v5 = vpop.f32.mrf.mxu0 }
 0x5c9   :  { %v95_v6 = vadd.f32 %v899_v13, %v94_v5 }
 0x604   :  { %v288_v32 = vpop.permute.xlu0 %287 }
 0x605   :  { %v290_v33 = vadd.f32 %v288_v32, %v280_v31 }
 0x607   :  { %723 = vtanh.f32 %v290_v33 }
 0x60d   :  { %v724_v34 = vpop.eup %723 }
 0x60e   :  { %293 = vrot.lane.b32.xlu1 %v724_v34, %s792_s17  ;;  %v98_v34 = vadd.f32 %v899_v13, %v894_v11 }
 0x680   :  { %v294_v36 = vpop.permute.xlu1 %293 }
 0x681   :  { %v296_v37 = vmul.f32 %v294_v36, %v277_v29 }
 0x683   :  { %298 = vrot.lane.b32.xlu2 %v296_v37, %s793_s3 }
 0x6dd   :  { %v299_v38 = vpop.permute.xlu2 %298 }
 0x6de   :  { %676 = vmatmul.msk.f32.vlgmr.msra.gmra.mxu1 %vm40_vm0, %v299_v38 }
 0x75b   :  { %v319_v41 = vpop.f32.mrf.mxu1 }
 0x75c   :  { %v322_v42 = vadd.f32 %v319_v41, %v92_v40 }
 0x75e   :  { %725 = vtanh.f32 %v322_v42  ;;  %v677_v46 = vmul.f32 -1.442695, %v322_v42 }
 0x760   :  { %727 = vpow2.f32 %v677_v46 }
 0x764   :  { %v726_v45 = vpop.eup %725 }
 0x765   :  { %345 = vrot.lane.b32.xlu0 %v726_v45, %s792_s17 }
 0x766   :  { %v728_v47 = vpop.eup %727 }
 0x767   :  { %v326_v48 = vadd.f32 1.0, %v728_v47 }
 0x769   :  { %729 = vrcp.f32 %v326_v48  ;;  %v338_v54 = vand.u32 2147483648, %v326_v48  ;;  %vm332_vm14 = vweird.f32 %v326_v48  ;;  %v336_v55 = vand.u32 2147483647, %v326_v48 }
 0x76b   :  { %v339_v57 = vor.u32 1.1754944e-38, %v338_v54  ;;  %vm337_vm1 = vcmp.eq.f32.partialorder %v336_v55, 8.507059e+37 }
 0x76f   :  { %v730_v49 = vpop.eup %729 }
 0x770   :  { %v328_v50 = vmul.f32 %v730_v49, %v326_v48  ;;  %vm333_vm13 = vweird.f32 %v730_v49 }
 0x771   :  { %vm334_vm15 = vmor %vm332_vm14, %vm333_vm13 }
 0x772   :  { %v329_v51 = vsub.f32 1.0, %v328_v50 }
 0x774   :  { %v330_v52 = vmul.f32 %v730_v49, %v329_v51 }
 0x776   :  { %v331_v53 = vadd.f32 %v730_v49, %v330_v52 }
 0x778   :  { %v335_v56 = vsel %vm334_vm15, %v730_v49, %v331_v53 }
 0x779   :  { %v340_v59 = vsel %vm337_vm1, %v339_v57, %v335_v56 }
 0x77a   :  { %v343_v61 = vmul.f32 %v340_v59, %v290_v33 }
 0x7d7   :  { %v346_v58 = vpop.permute.xlu0 %345 }
 0x7d8   :  { %v348_v60 = vmul.f32 %v346_v58, %v340_v59 }
 0x7da   :  { %350 = vrot.lane.b32.xlu1 %v348_v60, %s793_s3 }
 0x84c   :  { %v351_v62 = vpop.permute.xlu1 %350 }
 0x84d   :  { %v353_v63 = vadd.f32 %v351_v62, %v343_v61  ;;  %v101_v61 = vadd.f32 %v899_v13, %v927_v43 }
 0x84f   :  { %731 = vtanh.f32 %v353_v63 }
 0x855   :  { %v732_v0 = vpop.eup %731 }
 0x856   :  { %356 = vrot.lane.b32.xlu2 %v732_v0, %s792_s17 }
 0x8b0   :  { %v357_v1 = vpop.permute.xlu2 %356 }
 0x8b1   :  { %v359_v2 = vmul.f32 %v357_v1, %v340_v59 }
 0x8b3   :  { %361 = vrot.lane.b32.xlu0 %v359_v2, %s793_s3 }
 0x925   :  { %v362_v4 = vpop.permute.xlu0 %361 }
 0x926   :  { %678 = vmatmul.msk.f32.vlgmr.msra.gmra.mxu2 %vm40_vm0, %v362_v4 }
 0x9a9   :  { %v382_v7 = vpop.f32.mrf.mxu2 }
 0x9aa   :  { %v385_v8 = vadd.f32 %v382_v7, %v95_v6 }
 0x9ac   :  { %733 = vtanh.f32 %v385_v8  ;;  %v679_v10 = vmul.f32 -1.442695, %v385_v8 }
 0x9ae   :  { %735 = vpow2.f32 %v679_v10 }
 0x9b2   :  { %v734_v9 = vpop.eup %733 }
 0x9b3   :  { %408 = vrot.lane.b32.xlu1 %v734_v9, %s792_s17 }
 0x9b4   :  { %v736_v12 = vpop.eup %735 }
 0x9b5   :  { %v389_v14 = vadd.f32 1.0, %v736_v12 }
 0x9b7   :  { %737 = vrcp.f32 %v389_v14  ;;  %v401_v20 = vand.u32 2147483648, %v389_v14  ;;  %vm395_vm3 = vweird.f32 %v389_v14  ;;  %v399_v21 = vand.u32 2147483647, %v389_v14 }
 0x9b9   :  { %v402_v23 = vor.u32 1.1754944e-38, %v401_v20  ;;  %vm400_vm5 = vcmp.eq.f32.partialorder %v399_v21, 8.507059e+37 }
 0x9bd   :  { %v738_v15 = vpop.eup %737 }
 0x9be   :  { %v391_v16 = vmul.f32 %v738_v15, %v389_v14  ;;  %vm396_vm2 = vweird.f32 %v738_v15 }
 0x9bf   :  { %vm397_vm4 = vmor %vm395_vm3, %vm396_vm2  ;;  %vm645_vm3 = vcmask 64512  }
 0x9c0   :  { %v392_v17 = vsub.f32 1.0, %v391_v16 }
 0x9c2   :  { %v393_v18 = vmul.f32 %v738_v15, %v392_v17 }
 0x9c4   :  { %v394_v19 = vadd.f32 %v738_v15, %v393_v18 }
 0x9c6   :  { %v398_v22 = vsel %vm397_vm4, %v738_v15, %v394_v19 }
 0x9c7   :  { %v403_v25 = vsel %vm400_vm5, %v402_v23, %v398_v22 }
 0x9c8   :  { %v406_v27 = vmul.f32 %v403_v25, %v353_v63 }
 0xa25   :  { %v409_v24 = vpop.permute.xlu1 %408 }
 0xa26   :  { %v411_v26 = vmul.f32 %v409_v24, %v403_v25  ;;  %v104_v24 = vadd.f32 %v899_v13, %v929_v44 }
 0xa28   :  { %413 = vrot.lane.b32.xlu2 %v411_v26, %s793_s3 }
 0xa82   :  { %v414_v28 = vpop.permute.xlu2 %413 }
 0xa83   :  { %v416_v29 = vadd.f32 %v414_v28, %v406_v27 }
 0xa85   :  { %739 = vtanh.f32 %v416_v29 }
 0xa8b   :  { %v740_v30 = vpop.eup %739 }
 0xa8c   :  { %419 = vrot.lane.b32.xlu0 %v740_v30, %s792_s17 }
 0xafe   :  { %v420_v31 = vpop.permute.xlu0 %419 }
 0xaff   :  { %v422_v32 = vmul.f32 %v420_v31, %v403_v25 }
 0xb01   :  { %424 = vrot.lane.b32.xlu1 %v422_v32, %s793_s3 }
 0xb73   :  { %v425_v33 = vpop.permute.xlu1 %424 }
 0xb74   :  { %680 = vmatmul.msk.f32.vlgmr.msrb.gmra.mxu3 %vm40_vm0, %v425_v33 }
 0xbf7   :  { %v445_v35 = vpop.f32.mrf.mxu3 }
 0xbf8   :  { %v448_v36 = vadd.f32 %v445_v35, %v98_v34 }
 0xbfa   :  { %741 = vtanh.f32 %v448_v36  ;;  %v681_v38 = vmul.f32 -1.442695, %v448_v36 }
 0xbfc   :  { %743 = vpow2.f32 %v681_v38 }
 0xc00   :  { %v742_v37 = vpop.eup %741 }
 0xc01   :  { %471 = vrot.lane.b32.xlu2 %v742_v37, %s792_s17 }
 0xc02   :  { %v744_v39 = vpop.eup %743 }
 0xc03   :  { %v452_v40 = vadd.f32 1.0, %v744_v39 }
 0xc05   :  { %745 = vrcp.f32 %v452_v40  ;;  %v464_v48 = vand.u32 2147483648, %v452_v40  ;;  %vm458_vm7 = vweird.f32 %v452_v40  ;;  %v462_v11 = vand.u32 2147483647, %v452_v40 }
 0xc07   :  { %v465_v50 = vor.u32 1.1754944e-38, %v464_v48  ;;  %vm463_vm9 = vcmp.eq.f32.partialorder %v462_v11, 8.507059e+37  ;;  %v614_v48 = vld [vmem:[%s1010_s4 + $0x10] sm:$0xff]  ;;  %v613_v11 = vld [vmem:[%s1010_s4 + $0x8] sm:$0xff] }
 0xc0b   :  { %v746_v41 = vpop.eup %745 }
 0xc0c   :  { %v454_v42 = vmul.f32 %v746_v41, %v452_v40  ;;  %vm459_vm6 = vweird.f32 %v746_v41 }
 0xc0d   :  { %vm460_vm8 = vmor %vm458_vm7, %vm459_vm6 }
 0xc0e   :  { %v455_v45 = vsub.f32 1.0, %v454_v42 }
 0xc10   :  { %v456_v46 = vmul.f32 %v746_v41, %v455_v45 }
 0xc12   :  { %v457_v47 = vadd.f32 %v746_v41, %v456_v46 }
 0xc14   :  { %v461_v49 = vsel %vm460_vm8, %v746_v41, %v457_v47  ;;  %v615_v47 = vld [vmem:[%s1010_s4 + $0x18] sm:$0xff] }
 0xc15   :  { %v466_v52 = vsel %vm463_vm9, %v465_v50, %v461_v49  ;;  %637 = vmatpush.msra.mxu3 %v615_v47  ;;  %v612_v49 = vld [vmem:[%s1010_s4] sm:$0xff] }
 0xc16   :  { %v469_v54 = vmul.f32 %v466_v52, %v416_v29 }
 0xc17   :  { %638 = vmatpush.msra.mxu3 %v614_v48 }
 0xc19   :  { %639 = vmatpush.msra.mxu3 %v613_v11 }
 0xc1b   :  { %640 = vmatpush.msra.mxu3 %v612_v49 }
 0xc5b   :  { %v472_v51 = vpop.permute.xlu2 %471 }
 0xc5c   :  { %v474_v53 = vmul.f32 %v472_v51, %v466_v52 }
 0xc5e   :  { %476 = vrot.lane.b32.xlu0 %v474_v53, %s793_s3  ;;  %v700_v53 = vld [vmem:[%s1011_s5] ss:$0 sm:$0xff] }
 0xcd0   :  { %v477_v55 = vpop.permute.xlu0 %476 }
 0xcd1   :  { %v479_v56 = vadd.f32 %v477_v55, %v469_v54 }
 0xcd3   :  { %747 = vtanh.f32 %v479_v56 }
 0xcd9   :  { %v748_v57 = vpop.eup %747 }
 0xcda   :  { %482 = vrot.lane.b32.xlu1 %v748_v57, %s792_s17 }
 0xd4c   :  { %v483_v58 = vpop.permute.xlu1 %482 }
 0xd4d   :  { %v485_v59 = vmul.f32 %v483_v58, %v466_v52 }
 0xd4f   :  { %487 = vrot.lane.b32.xlu2 %v485_v59, %s793_s3 }
 0xda9   :  { %v488_v60 = vpop.permute.xlu2 %487 }
 0xdaa   :  { %682 = vmatmul.msk.f32.vlgmr.msrb.gmra.mxu1 %vm40_vm0, %v488_v60 }
 0xe27   :  { %v508_v62 = vpop.f32.mrf.mxu1 }
 0xe28   :  { %v511_v63 = vadd.f32 %v508_v62, %v101_v61 }
 0xe2a   :  { %749 = vtanh.f32 %v511_v63  ;;  %v683_v1 = vmul.f32 -1.442695, %v511_v63 }
 0xe2c   :  { %751 = vpow2.f32 %v683_v1 }
 0xe30   :  { %v750_v0 = vpop.eup %749 }
 0xe31   :  { %534 = vrot.lane.b32.xlu0 %v750_v0, %s792_s17 }
 0xe32   :  { %v752_v2 = vpop.eup %751 }
 0xe33   :  { %v515_v3 = vadd.f32 1.0, %v752_v2 }
 0xe35   :  { %753 = vrcp.f32 %v515_v3  ;;  %v527_v9 = vand.u32 2147483648, %v515_v3  ;;  %vm521_vm11 = vweird.f32 %v515_v3  ;;  %v525_v43 = vand.u32 2147483647, %v515_v3 }
 0xe37   :  { %v528_v12 = vor.u32 1.1754944e-38, %v527_v9  ;;  %vm526_vm13 = vcmp.eq.f32.partialorder %v525_v43, 8.507059e+37 }
 0xe3b   :  { %v754_v4 = vpop.eup %753 }
 0xe3c   :  { %v517_v5 = vmul.f32 %v754_v4, %v515_v3  ;;  %vm522_vm10 = vweird.f32 %v754_v4 }
 0xe3d   :  { %vm523_vm12 = vmor %vm521_vm11, %vm522_vm10 }
 0xe3e   :  { %v518_v6 = vsub.f32 1.0, %v517_v5 }
 0xe40   :  { %v519_v7 = vmul.f32 %v754_v4, %v518_v6 }
 0xe42   :  { %v520_v8 = vadd.f32 %v754_v4, %v519_v7 }
 0xe44   :  { %v524_v10 = vsel %vm523_vm12, %v754_v4, %v520_v8 }
 0xe45   :  { %v529_v15 = vsel %vm526_vm13, %v528_v12, %v524_v10 }
 0xe46   :  { %v532_v17 = vmul.f32 %v529_v15, %v479_v56 }
 0xea3   :  { %v535_v14 = vpop.permute.xlu0 %534 }
 0xea4   :  { %v537_v16 = vmul.f32 %v535_v14, %v529_v15 }
 0xea6   :  { %539 = vrot.lane.b32.xlu1 %v537_v16, %s793_s3 }
 0xf18   :  { %v540_v18 = vpop.permute.xlu1 %539 }
 0xf19   :  { %v542_v19 = vadd.f32 %v540_v18, %v532_v17 }
 0xf1b   :  { %755 = vtanh.f32 %v542_v19 }
 0xf21   :  { %v756_v20 = vpop.eup %755 }
 0xf22   :  { %545 = vrot.lane.b32.xlu2 %v756_v20, %s792_s17 }
 0xf7c   :  { %v546_v21 = vpop.permute.xlu2 %545 }
 0xf7d   :  { %v548_v22 = vmul.f32 %v546_v21, %v529_v15 }
 0xf7f   :  { %550 = vrot.lane.b32.xlu0 %v548_v22, %s793_s3 }
 0xff1   :  { %v551_v23 = vpop.permute.xlu0 %550 }
 0xff2   :  { %684 = vmatmul.msk.f32.vlgmr.msrb.gmra.mxu2 %vm40_vm0, %v551_v23 }
0x1075   :  { %v571_v25 = vpop.f32.mrf.mxu2 }
0x1076   :  { %v574_v26 = vadd.f32 %v571_v25, %v104_v24 }
0x1078   :  { %757 = vtanh.f32 %v574_v26  ;;  %v685_v28 = vmul.f32 -1.442695, %v574_v26 }
0x107a   :  { %759 = vpow2.f32 %v685_v28 }
0x107e   :  { %v758_v27 = vpop.eup %757 }
0x107f   :  { %597 = vrot.lane.b32.xlu1 %v758_v27, %s792_s17 }
0x1080   :  { %v760_v29 = vpop.eup %759 }
0x1081   :  { %v578_v30 = vadd.f32 1.0, %v760_v29 }
0x1083   :  { %761 = vrcp.f32 %v578_v30  ;;  %v590_v36 = vand.u32 2147483648, %v578_v30  ;;  %vm584_vm15 = vweird.f32 %v578_v30  ;;  %v588_v13 = vand.u32 2147483647, %v578_v30 }
0x1085   :  { %v591_v37 = vor.u32 1.1754944e-38, %v590_v36  ;;  %vm589_vm2 = vcmp.eq.f32.partialorder %v588_v13, 8.507059e+37 }
0x1089   :  { %v762_v31 = vpop.eup %761 }
0x108a   :  { %v580_v32 = vmul.f32 %v762_v31, %v578_v30  ;;  %vm585_vm14 = vweird.f32 %v762_v31 }
0x108b   :  { %vm586_vm1 = vmor %vm584_vm15, %vm585_vm14 }
0x108c   :  { %v581_v33 = vsub.f32 1.0, %v580_v32 }
0x108e   :  { %v582_v34 = vmul.f32 %v762_v31, %v581_v33 }
0x1090   :  { %v583_v35 = vadd.f32 %v762_v31, %v582_v34 }
0x1092   :  { %v587_v44 = vsel %vm586_vm1, %v762_v31, %v583_v35 }
0x1093   :  { %v592_v39 = vsel %vm589_vm2, %v591_v37, %v587_v44 }
0x1094   :  { %v595_v41 = vmul.f32 %v592_v39, %v542_v19 }
0x10f1   :  { %v598_v38 = vpop.permute.xlu1 %597 }
0x10f2   :  { %v600_v40 = vmul.f32 %v598_v38, %v592_v39 }
0x10f4   :  { %602 = vrot.lane.b32.xlu2 %v600_v40, %s793_s3 }
0x114e   :  { %v603_v42 = vpop.permute.xlu2 %602 }
0x114f   :  { %v605_v45 = vadd.f32 %v603_v42, %v595_v41 }
0x1151   :  { %763 = vtanh.f32 %v605_v45 }
0x1157   :  { %v764_v46 = vpop.eup %763 }
0x1158   :  { %608 = vrot.lane.b32.xlu0 %v764_v46, %s792_s17  ;;  %s654_s17 = sshll.u32 %s1012_s6, 4  ;;  %s655_s17 = int_to_ptr.hbm [resolvable:$true] %s654_s17 }
0x11ca   :  { %v609_v50 = vpop.permute.xlu0 %608 }
0x11cb   :  { %v611_v51 = vmul.f32 %v609_v50, %v592_v39 }
0x11cd   :  { %621 = vrot.lane.b32.xlu1 %v611_v51, %s793_s3 }
0x123f   :  { %v622_v52 = vpop.permute.xlu1 %621 }
0x1240   :  { %686 = vmatmul.msk.f32.vlgmr.msra.gmra.mxu3 %vm40_vm0, %v622_v52 }
0x12c3   :  { %v642_v54 = vpop.f32.mrf.mxu3 }
0x12c4   :  { %v643_v55 = vadd.f32 %v700_v53, %v642_v54 }
0x12c6   :  { %646 = vst.msk [vmem:[#allocation2] sm:$0xff] %vm645_vm3, %v643_v55 }
0x12c7   :  { %657 = dma.vmem_to_hbm [thread:$0]  %s653_s15, 128, %s655_s17, [#allocation3]  }
0x12c8   :  { %789 = dma.done.wait [#allocation3], 128  }
0x12c9   :  { %790 = vsyncadd [#allocation3], 4294967168 }
0x12ca   :  { %662 = vsyncpa [#allocation3], 1 }

</bundles_post_ra>
